<compile_context>
chip_gen: v6e
topology: v6e:2x2x1
jax: 0.10.0
libtpu: 0.0.40
codegen_flags: <defaults>
</compile_context>

<pallas_src>
import functools
import math

import jax
import jax.numpy as jnp
from jax.experimental import pallas as pl
from jax.experimental.pallas import tpu as pltpu


# ----------------------------------------------------------------------------
# Fused ResConvStack kernel (activations never leave registers/VMEM)
# ----------------------------------------------------------------------------
def _res_conv_stack_kernel(H,
                           x_ref,
                           wb1_ref, b1_ref, wb2_ref, b2_ref,
                           wb3_ref, b3_ref, wb4_ref, b4_ref,
                           o_ref):
    """Fused 4-conv forward on lane-dense (rows, W*C) activation slabs.

    x_ref   : (rows, W*C0)        rows = images_in_block * H, lane = w*C0 + c
    wbX_ref : (3, W*Cin, W*Cout)  banded per-kh weight matrices (the dw taps
                                  and the zero 'same' padding in w are folded
                                  into the band structure)
    bX_ref  : (1, W*Cout)         bias tiled across w
    o_ref   : (rows, W*Cout_last)
    """
    rows = x_ref.shape[0]

    def conv(x, wb_ref, b_ref):
        L = x.shape[1]
        # Row-within-image index (for zeroing the top/bottom halo rows).
        h = jax.lax.broadcasted_iota(jnp.int32, (rows, L), 0) % H
        # kh = 1 (center row): no shift, no mask.
        acc = jnp.dot(x, wb_ref[1], preferred_element_type=jnp.float32)
        # kh = 0: needs row h-1 -> sublane roll forward by 1, zero rows h == 0.
        x_dn = jnp.where(h == 0, 0.0, pltpu.roll(x, shift=1, axis=0))
        acc = acc + jnp.dot(x_dn, wb_ref[0], preferred_element_type=jnp.float32)
        # kh = 2: needs row h+1 -> sublane roll backward, zero rows h == H-1.
        x_up = jnp.where(h == H - 1, 0.0, pltpu.roll(x, shift=rows - 1, axis=0))
        acc = acc + jnp.dot(x_up, wb_ref[2], preferred_element_type=jnp.float32)
        return acc + b_ref[...]                       # bias broadcast over rows

    a1 = conv(x_ref[...], wb1_ref, b1_ref)            # RescaleConv conv: 16 -> 4
    a2 = conv(a1, wb2_ref, b2_ref)                    # Conv2d 4 -> 8
    a3 = a2 + conv(a2, wb3_ref, b3_ref)               # ResidualAdd(Conv 8 -> 8)
    a4 = a3 + conv(a3, wb4_ref, b4_ref)               # ResidualAdd(Conv 8 -> 8)
    o_ref[...] = a4.astype(o_ref.dtype)


# ----------------------------------------------------------------------------
# Weight pre-processing (done once per call, in the wrapper)
# ----------------------------------------------------------------------------
def _make_band(w_oihw, W):
    """OIHW conv weight -> per-kh banded matmul matrices (kh, W*Cin, W*Cout).

    band[kh, w_in*Cin + ci, w_out*Cout + co] =
        w[co, ci, kh, w_in - w_out + 1]   if 0 <= w_in - w_out + 1 < kw else 0
    so "same" padding along w is handled by the band structure itself.
    """
    cout, cin, kh, kw = w_oihw.shape
    w_perm = jnp.transpose(w_oihw, (2, 3, 1, 0))                     # (kh, kw, cin, cout)
    dw = jnp.arange(W)[:, None] - jnp.arange(W)[None, :] + kw // 2   # (W_in, W_out)
    valid = (dw >= 0) & (dw < kw)
    band = w_perm[:, jnp.clip(dw, 0, kw - 1)]                        # (kh, W_in, W_out, cin, cout)
    band = jnp.where(valid[None, :, :, None, None], band, 0.0)
    band = jnp.transpose(band, (0, 1, 3, 2, 4))                      # (kh, W_in, cin, W_out, cout)
    return band.reshape(kh, W * cin, W * cout)


def _tile_bias(b, W):
    return jnp.tile(b, W).reshape(1, -1)                             # (1, W*Cout)


# ----------------------------------------------------------------------------
# Wrapper: one layout op in, one pallas_call, one layout op out
# ----------------------------------------------------------------------------
@functools.partial(jax.jit, static_argnames=("batch_grid",))
def _res_conv_stack_forward(x, p, *, batch_grid):
    B, C, H, W = x.shape
    r = 2
    Hs, Ws = H // r, W // r
    C0 = C * r * r                       # 16

    # PixelUnshuffle(2) fused with NCHW -> lane-dense (B*Hs, Ws*C0) slab.
    x_slab = jnp.transpose(
        x.reshape(B, C, Hs, r, Ws, r), (0, 2, 4, 1, 3, 5)
    ).reshape(B * Hs, Ws * C0)

    wb1 = _make_band(p["rescale_w"], Ws); bb1 = _tile_bias(p["rescale_b"], Ws)
    wb2 = _make_band(p["l1_w"], Ws);      bb2 = _tile_bias(p["l1_b"], Ws)
    wb3 = _make_band(p["l2_w"], Ws);      bb3 = _tile_bias(p["l2_b"], Ws)
    wb4 = _make_band(p["l2r1_w"], Ws);    bb4 = _tile_bias(p["l2r1_b"], Ws)
    c4 = p["l2r1_w"].shape[0]            # 8

    gb = B if (batch_grid and B > 1) else 1
    rows_blk = (B // gb) * Hs

    inputs = [x_slab, wb1, bb1, wb2, bb2, wb3, bb3, wb4, bb4]

    def _resident(shape):
        zeros = (0,) * len(shape)
        return pl.BlockSpec(shape, lambda i, _z=zeros: _z)

    in_specs = [pl.BlockSpec((rows_blk, Ws * C0), lambda i: (i, 0))]
    in_specs += [_resident(a.shape) for a in inputs[1:]]
    out_specs = pl.BlockSpec((rows_blk, Ws * c4), lambda i: (i, 0))

    flops = sum(2 * B * Hs * wb.shape[0] * wb.shape[1] * wb.shape[2]
                for wb in (wb1, wb2, wb3, wb4))
    bytes_accessed = 4 * (sum(a.size for a in inputs) + B * Hs * Ws * c4)

    out = pl.pallas_call(
        functools.partial(_res_conv_stack_kernel, Hs),
        out_shape=jax.ShapeDtypeStruct((B * Hs, Ws * c4), x.dtype),
        grid=(gb,),
        in_specs=in_specs,
        out_specs=out_specs,
        compiler_params=pltpu.CompilerParams(
            dimension_semantics=("parallel",)),
        cost_estimate=pl.CostEstimate(
            flops=flops, transcendentals=0, bytes_accessed=bytes_accessed),
    )(*inputs)

    # Rows are (b, h), lanes are (w, c) -> NCHW on the way out (layout only).
    return jnp.transpose(out.reshape(B, Hs, Ws, c4), (0, 3, 1, 2))


def _multi_tensorcore_chip():
    """True on chips with >1 TensorCore behind one device (v7x, v4 megacore)."""
    try:
        kind = jax.devices()[0].device_kind.lower()
    except Exception:
        return False
    return ("v7" in kind) or ("v4" in kind)


def res_conv_stack_pallas(x, p):
    """Forward of the fixed ResConvStack config. x: NCHW -> output: NCHW."""
    return _res_conv_stack_forward(x, p, batch_grid=_multi_tensorcore_chip())


# ----------------------------------------------------------------------------
# Pure-JAX reference (full f32 precision)
# ----------------------------------------------------------------------------
def pixel_unshuffle_nchw(x, r):
    B, C, H, W = x.shape
    x = x.reshape(B, C, H // r, r, W // r, r)
    x = jnp.transpose(x, (0, 1, 3, 5, 2, 4))
    return x.reshape(B, C * r * r, H // r, W // r)


def _conv2d_ref(x, w, b, padding=1):
    out = jax.lax.conv_general_dilated(
        x, w, window_strides=(1, 1),
        padding=[(padding, padding), (padding, padding)],
        dimension_numbers=("NCHW", "OIHW", "NCHW"),
        precision=jax.lax.Precision.HIGHEST)
    return out + b.reshape(1, -1, 1, 1)


def res_conv_stack_ref(x, p):
    x = pixel_unshuffle_nchw(x, 2)
    x = _conv2d_ref(x, p["rescale_w"], p["rescale_b"])
    x = _conv2d_ref(x, p["l1_w"], p["l1_b"])
    x = x + _conv2d_ref(x, p["l2_w"], p["l2_b"])
    x = x + _conv2d_ref(x, p["l2r1_w"], p["l2r1_b"])
    return x


# ----------------------------------------------------------------------------
# Deterministic parameter init (shapes match the torch module's __init__)
# ----------------------------------------------------------------------------
def _init_conv(key, cout, cin, k):
    kw, kb = jax.random.split(key)
    bound = 1.0 / math.sqrt(cin * k * k)
    w = jax.random.uniform(kw, (cout, cin, k, k), jnp.float32, -bound, bound)
    b = jax.random.uniform(kb, (cout,), jnp.float32, -bound, bound)
    return w, b


if __name__ == "__main__":
    key = jax.random.PRNGKey(0)
    kx, k1, k2, k3, k4 = jax.random.split(key, 5)

    # Input: NCHW, batch=2, channels=4, spatial 16x16 (divisible by scale=2)
    x = jax.random.normal(kx, (2, 4, 16, 16), jnp.float32)

    params = {}
    params["rescale_w"], params["rescale_b"] = _init_conv(k1, 4, 16, 3)  # Conv2d(16,4,3)
    params["l1_w"], params["l1_b"] = _init_conv(k2, 8, 4, 3)             # Conv2d(4,8,3)
    params["l2_w"], params["l2_b"] = _init_conv(k3, 8, 8, 3)             # Conv2d(8,8,3)
    params["l2r1_w"], params["l2r1_b"] = _init_conv(k4, 8, 8, 3)         # Conv2d(8,8,3)

    out = jax.block_until_ready(res_conv_stack_pallas(x, params))
    ref = jax.block_until_ready(res_conv_stack_ref(x, params))

    assert out.shape == (2, 8, 8, 8), out.shape
    assert jnp.allclose(out, ref, atol=1e-4, rtol=1e-4), float(
        jnp.max(jnp.abs(out - ref)))

    print("KERNEL_OK")
</pallas_src>

<mosaic_0001>
module attributes {stable_mosaic.version = 11 : i64} {
  func.func @_res_conv_stack_kernel(%arg0: i32, %arg1: memref<16x128xf32, #tpu.memory_space<vmem>>, %arg2: memref<3x128x32xf32, #tpu.memory_space<vmem>>, %arg3: memref<1x32xf32, #tpu.memory_space<vmem>>, %arg4: memref<3x32x64xf32, #tpu.memory_space<vmem>>, %arg5: memref<1x64xf32, #tpu.memory_space<vmem>>, %arg6: memref<3x64x64xf32, #tpu.memory_space<vmem>>, %arg7: memref<1x64xf32, #tpu.memory_space<vmem>>, %arg8: memref<3x64x64xf32, #tpu.memory_space<vmem>>, %arg9: memref<1x64xf32, #tpu.memory_space<vmem>>, %arg10: memref<16x64xf32, #tpu.memory_space<vmem>>) attributes {dimension_semantics = [#tpu.dimension_semantics<parallel>], iteration_bounds = array<i64: 1>, scalar_prefetch = 0 : i64, scratch_operands = 0 : i64, tpu.core_type = #tpu.core_type<tc>, window_params = [{transform_indices = @transform_0, window_bounds = array<i64: 16, 128>}, {pipeline_mode = #tpu.pipeline_mode<synchronous>, transform_indices = @transform_1, window_bounds = array<i64: 3, 128, 32>}, {pipeline_mode = #tpu.pipeline_mode<synchronous>, transform_indices = @transform_2, window_bounds = array<i64: 1, 32>}, {pipeline_mode = #tpu.pipeline_mode<synchronous>, transform_indices = @transform_3, window_bounds = array<i64: 3, 32, 64>}, {pipeline_mode = #tpu.pipeline_mode<synchronous>, transform_indices = @transform_4, window_bounds = array<i64: 1, 64>}, {pipeline_mode = #tpu.pipeline_mode<synchronous>, transform_indices = @transform_5, window_bounds = array<i64: 3, 64, 64>}, {pipeline_mode = #tpu.pipeline_mode<synchronous>, transform_indices = @transform_6, window_bounds = array<i64: 1, 64>}, {pipeline_mode = #tpu.pipeline_mode<synchronous>, transform_indices = @transform_7, window_bounds = array<i64: 3, 64, 64>}, {pipeline_mode = #tpu.pipeline_mode<synchronous>, transform_indices = @transform_8, window_bounds = array<i64: 1, 64>}, {transform_indices = @transform_9, window_bounds = array<i64: 16, 64>}]} {
    %c0 = arith.constant 0 : index
    %c0_0 = arith.constant 0 : index
    %0 = vector.load %arg1[%c0, %c0_0] : memref<16x128xf32, #tpu.memory_space<vmem>>, vector<16x128xf32>
    %1 = tpu.iota {dimensions = array<i32: 0>} : vector<16x128xi32>
    %c8_i32 = arith.constant 8 : i32
    %c0_i32 = arith.constant 0 : i32
    %2 = arith.cmpi eq, %c8_i32, %c0_i32 : i32
    %c1_i32 = arith.constant 1 : i32
    %3 = arith.select %2, %c1_i32, %c8_i32 : i32
    %4 = vector.broadcast %3 : i32 to vector<16x128xi32>
    %5 = arith.remsi %1, %4 : vector<16x128xi32>
    %c0_i32_1 = arith.constant 0 : i32
    %6 = vector.broadcast %c0_i32_1 : i32 to vector<16x128xi32>
    %7 = arith.cmpi ne, %5, %6 : vector<16x128xi32>
    %c0_i32_2 = arith.constant 0 : i32
    %8 = vector.broadcast %c0_i32_2 : i32 to vector<16x128xi32>
    %9 = arith.cmpi slt, %5, %8 : vector<16x128xi32>
    %c0_i32_3 = arith.constant 0 : i32
    %10 = arith.cmpi slt, %3, %c0_i32_3 : i32
    %11 = vector.broadcast %10 : i1 to vector<16x128xi1>
    %12 = vector.broadcast %11 : vector<16x128xi1> to vector<16x128xi1>
    %13 = arith.xori %9, %12 : vector<16x128xi1>
    %14 = arith.andi %13, %7 : vector<16x128xi1>
    %15 = vector.broadcast %3 : i32 to vector<16x128xi32>
    %16 = arith.addi %5, %15 : vector<16x128xi32>
    %17 = arith.select %14, %16, %5 : vector<16x128xi1>, vector<16x128xi32>
    %c1 = arith.constant 1 : index
    %c0_4 = arith.constant 0 : index
    %c0_5 = arith.constant 0 : index
    %18 = vector.load %arg2[%c1, %c0_4, %c0_5] : memref<3x128x32xf32, #tpu.memory_space<vmem>>, vector<1x128x32xf32>
    %19 = vector.shape_cast %18 : vector<1x128x32xf32> to vector<128x32xf32>
    %cst = arith.constant dense<0.000000e+00> : vector<16x32xf32>
    %20 = tpu.matmul %0, %19, %cst {dimension_numbers = #tpu.dot_dimension_numbers<[1], [0], [0], [1], [0, 0, 1, 1], [], []>} : vector<16x128xf32>, vector<128x32xf32>, vector<16x32xf32> -> vector<16x32xf32>
    %c0_i32_6 = arith.constant 0 : i32
    %21 = vector.broadcast %c0_i32_6 : i32 to vector<16x128xi32>
    %22 = arith.cmpi eq, %17, %21 : vector<16x128xi32>
    %c1_i32_7 = arith.constant 1 : i32
    %23 = tpu.dynamic_rotate %0 by %c1_i32_7 dim 0 : vector<16x128xf32>, i32 -> vector<16x128xf32>
    %cst_8 = arith.constant 0.000000e+00 : f32
    %24 = vector.broadcast %cst_8 : f32 to vector<16x128xf32>
    %25 = arith.select %22, %24, %23 : vector<16x128xi1>, vector<16x128xf32>
    %c0_9 = arith.constant 0 : index
    %c0_10 = arith.constant 0 : index
    %c0_11 = arith.constant 0 : index
    %26 = vector.load %arg2[%c0_9, %c0_10, %c0_11] : memref<3x128x32xf32, #tpu.memory_space<vmem>>, vector<1x128x32xf32>
    %27 = vector.shape_cast %26 : vector<1x128x32xf32> to vector<128x32xf32>
    %cst_12 = arith.constant dense<0.000000e+00> : vector<16x32xf32>
    %28 = tpu.matmul %25, %27, %cst_12 {dimension_numbers = #tpu.dot_dimension_numbers<[1], [0], [0], [1], [0, 0, 1, 1], [], []>} : vector<16x128xf32>, vector<128x32xf32>, vector<16x32xf32> -> vector<16x32xf32>
    %29 = arith.addf %20, %28 : vector<16x32xf32>
    %c7_i32 = arith.constant 7 : i32
    %30 = vector.broadcast %c7_i32 : i32 to vector<16x128xi32>
    %31 = arith.cmpi eq, %17, %30 : vector<16x128xi32>
    %c15_i32 = arith.constant 15 : i32
    %32 = tpu.dynamic_rotate %0 by %c15_i32 dim 0 : vector<16x128xf32>, i32 -> vector<16x128xf32>
    %cst_13 = arith.constant 0.000000e+00 : f32
    %33 = vector.broadcast %cst_13 : f32 to vector<16x128xf32>
    %34 = arith.select %31, %33, %32 : vector<16x128xi1>, vector<16x128xf32>
    %c2 = arith.constant 2 : index
    %c0_14 = arith.constant 0 : index
    %c0_15 = arith.constant 0 : index
    %35 = vector.load %arg2[%c2, %c0_14, %c0_15] : memref<3x128x32xf32, #tpu.memory_space<vmem>>, vector<1x128x32xf32>
    %36 = vector.shape_cast %35 : vector<1x128x32xf32> to vector<128x32xf32>
    %cst_16 = arith.constant dense<0.000000e+00> : vector<16x32xf32>
    %37 = tpu.matmul %34, %36, %cst_16 {dimension_numbers = #tpu.dot_dimension_numbers<[1], [0], [0], [1], [0, 0, 1, 1], [], []>} : vector<16x128xf32>, vector<128x32xf32>, vector<16x32xf32> -> vector<16x32xf32>
    %38 = arith.addf %29, %37 : vector<16x32xf32>
    %c0_17 = arith.constant 0 : index
    %c0_18 = arith.constant 0 : index
    %39 = vector.load %arg3[%c0_17, %c0_18] : memref<1x32xf32, #tpu.memory_space<vmem>>, vector<1x32xf32>
    %40 = vector.broadcast %39 : vector<1x32xf32> to vector<16x32xf32>
    %41 = arith.addf %38, %40 : vector<16x32xf32>
    %42 = tpu.iota {dimensions = array<i32: 0>} : vector<16x32xi32>
    %c8_i32_19 = arith.constant 8 : i32
    %c0_i32_20 = arith.constant 0 : i32
    %43 = arith.cmpi eq, %c8_i32_19, %c0_i32_20 : i32
    %c1_i32_21 = arith.constant 1 : i32
    %44 = arith.select %43, %c1_i32_21, %c8_i32_19 : i32
    %45 = vector.broadcast %44 : i32 to vector<16x32xi32>
    %46 = arith.remsi %42, %45 : vector<16x32xi32>
    %c0_i32_22 = arith.constant 0 : i32
    %47 = vector.broadcast %c0_i32_22 : i32 to vector<16x32xi32>
    %48 = arith.cmpi ne, %46, %47 : vector<16x32xi32>
    %c0_i32_23 = arith.constant 0 : i32
    %49 = vector.broadcast %c0_i32_23 : i32 to vector<16x32xi32>
    %50 = arith.cmpi slt, %46, %49 : vector<16x32xi32>
    %c0_i32_24 = arith.constant 0 : i32
    %51 = arith.cmpi slt, %44, %c0_i32_24 : i32
    %52 = vector.broadcast %51 : i1 to vector<16x32xi1>
    %53 = vector.broadcast %52 : vector<16x32xi1> to vector<16x32xi1>
    %54 = arith.xori %50, %53 : vector<16x32xi1>
    %55 = arith.andi %54, %48 : vector<16x32xi1>
    %56 = vector.broadcast %44 : i32 to vector<16x32xi32>
    %57 = arith.addi %46, %56 : vector<16x32xi32>
    %58 = arith.select %55, %57, %46 : vector<16x32xi1>, vector<16x32xi32>
    %c1_25 = arith.constant 1 : index
    %c0_26 = arith.constant 0 : index
    %c0_27 = arith.constant 0 : index
    %59 = vector.load %arg4[%c1_25, %c0_26, %c0_27] : memref<3x32x64xf32, #tpu.memory_space<vmem>>, vector<1x32x64xf32>
    %60 = vector.shape_cast %59 : vector<1x32x64xf32> to vector<32x64xf32>
    %cst_28 = arith.constant dense<0.000000e+00> : vector<16x64xf32>
    %61 = tpu.matmul %41, %60, %cst_28 {dimension_numbers = #tpu.dot_dimension_numbers<[1], [0], [0], [1], [0, 0, 1, 1], [], []>} : vector<16x32xf32>, vector<32x64xf32>, vector<16x64xf32> -> vector<16x64xf32>
    %c0_i32_29 = arith.constant 0 : i32
    %62 = vector.broadcast %c0_i32_29 : i32 to vector<16x32xi32>
    %63 = arith.cmpi eq, %58, %62 : vector<16x32xi32>
    %c1_i32_30 = arith.constant 1 : i32
    %64 = tpu.dynamic_rotate %41 by %c1_i32_30 dim 0 : vector<16x32xf32>, i32 -> vector<16x32xf32>
    %cst_31 = arith.constant 0.000000e+00 : f32
    %65 = vector.broadcast %cst_31 : f32 to vector<16x32xf32>
    %66 = arith.select %63, %65, %64 : vector<16x32xi1>, vector<16x32xf32>
    %c0_32 = arith.constant 0 : index
    %c0_33 = arith.constant 0 : index
    %c0_34 = arith.constant 0 : index
    %67 = vector.load %arg4[%c0_32, %c0_33, %c0_34] : memref<3x32x64xf32, #tpu.memory_space<vmem>>, vector<1x32x64xf32>
    %68 = vector.shape_cast %67 : vector<1x32x64xf32> to vector<32x64xf32>
    %cst_35 = arith.constant dense<0.000000e+00> : vector<16x64xf32>
    %69 = tpu.matmul %66, %68, %cst_35 {dimension_numbers = #tpu.dot_dimension_numbers<[1], [0], [0], [1], [0, 0, 1, 1], [], []>} : vector<16x32xf32>, vector<32x64xf32>, vector<16x64xf32> -> vector<16x64xf32>
    %70 = arith.addf %61, %69 : vector<16x64xf32>
    %c7_i32_36 = arith.constant 7 : i32
    %71 = vector.broadcast %c7_i32_36 : i32 to vector<16x32xi32>
    %72 = arith.cmpi eq, %58, %71 : vector<16x32xi32>
    %c15_i32_37 = arith.constant 15 : i32
    %73 = tpu.dynamic_rotate %41 by %c15_i32_37 dim 0 : vector<16x32xf32>, i32 -> vector<16x32xf32>
    %cst_38 = arith.constant 0.000000e+00 : f32
    %74 = vector.broadcast %cst_38 : f32 to vector<16x32xf32>
    %75 = arith.select %72, %74, %73 : vector<16x32xi1>, vector<16x32xf32>
    %c2_39 = arith.constant 2 : index
    %c0_40 = arith.constant 0 : index
    %c0_41 = arith.constant 0 : index
    %76 = vector.load %arg4[%c2_39, %c0_40, %c0_41] : memref<3x32x64xf32, #tpu.memory_space<vmem>>, vector<1x32x64xf32>
    %77 = vector.shape_cast %76 : vector<1x32x64xf32> to vector<32x64xf32>
    %cst_42 = arith.constant dense<0.000000e+00> : vector<16x64xf32>
    %78 = tpu.matmul %75, %77, %cst_42 {dimension_numbers = #tpu.dot_dimension_numbers<[1], [0], [0], [1], [0, 0, 1, 1], [], []>} : vector<16x32xf32>, vector<32x64xf32>, vector<16x64xf32> -> vector<16x64xf32>
    %79 = arith.addf %70, %78 : vector<16x64xf32>
    %c0_43 = arith.constant 0 : index
    %c0_44 = arith.constant 0 : index
    %80 = vector.load %arg5[%c0_43, %c0_44] : memref<1x64xf32, #tpu.memory_space<vmem>>, vector<1x64xf32>
    %81 = vector.broadcast %80 : vector<1x64xf32> to vector<16x64xf32>
    %82 = arith.addf %79, %81 : vector<16x64xf32>
    %83 = tpu.iota {dimensions = array<i32: 0>} : vector<16x64xi32>
    %c8_i32_45 = arith.constant 8 : i32
    %c0_i32_46 = arith.constant 0 : i32
    %84 = arith.cmpi eq, %c8_i32_45, %c0_i32_46 : i32
    %c1_i32_47 = arith.constant 1 : i32
    %85 = arith.select %84, %c1_i32_47, %c8_i32_45 : i32
    %86 = vector.broadcast %85 : i32 to vector<16x64xi32>
    %87 = arith.remsi %83, %86 : vector<16x64xi32>
    %c0_i32_48 = arith.constant 0 : i32
    %88 = vector.broadcast %c0_i32_48 : i32 to vector<16x64xi32>
    %89 = arith.cmpi ne, %87, %88 : vector<16x64xi32>
    %c0_i32_49 = arith.constant 0 : i32
    %90 = vector.broadcast %c0_i32_49 : i32 to vector<16x64xi32>
    %91 = arith.cmpi slt, %87, %90 : vector<16x64xi32>
    %c0_i32_50 = arith.constant 0 : i32
    %92 = arith.cmpi slt, %85, %c0_i32_50 : i32
    %93 = vector.broadcast %92 : i1 to vector<16x64xi1>
    %94 = vector.broadcast %93 : vector<16x64xi1> to vector<16x64xi1>
    %95 = arith.xori %91, %94 : vector<16x64xi1>
    %96 = arith.andi %95, %89 : vector<16x64xi1>
    %97 = vector.broadcast %85 : i32 to vector<16x64xi32>
    %98 = arith.addi %87, %97 : vector<16x64xi32>
    %99 = arith.select %96, %98, %87 : vector<16x64xi1>, vector<16x64xi32>
    %c1_51 = arith.constant 1 : index
    %c0_52 = arith.constant 0 : index
    %c0_53 = arith.constant 0 : index
    %100 = vector.load %arg6[%c1_51, %c0_52, %c0_53] : memref<3x64x64xf32, #tpu.memory_space<vmem>>, vector<1x64x64xf32>
    %101 = vector.shape_cast %100 : vector<1x64x64xf32> to vector<64x64xf32>
    %cst_54 = arith.constant dense<0.000000e+00> : vector<16x64xf32>
    %102 = tpu.matmul %82, %101, %cst_54 {dimension_numbers = #tpu.dot_dimension_numbers<[1], [0], [0], [1], [0, 0, 1, 1], [], []>} : vector<16x64xf32>, vector<64x64xf32>, vector<16x64xf32> -> vector<16x64xf32>
    %c0_i32_55 = arith.constant 0 : i32
    %103 = vector.broadcast %c0_i32_55 : i32 to vector<16x64xi32>
    %104 = arith.cmpi eq, %99, %103 : vector<16x64xi32>
    %c1_i32_56 = arith.constant 1 : i32
    %105 = tpu.dynamic_rotate %82 by %c1_i32_56 dim 0 : vector<16x64xf32>, i32 -> vector<16x64xf32>
    %cst_57 = arith.constant 0.000000e+00 : f32
    %106 = vector.broadcast %cst_57 : f32 to vector<16x64xf32>
    %107 = arith.select %104, %106, %105 : vector<16x64xi1>, vector<16x64xf32>
    %c0_58 = arith.constant 0 : index
    %c0_59 = arith.constant 0 : index
    %c0_60 = arith.constant 0 : index
    %108 = vector.load %arg6[%c0_58, %c0_59, %c0_60] : memref<3x64x64xf32, #tpu.memory_space<vmem>>, vector<1x64x64xf32>
    %109 = vector.shape_cast %108 : vector<1x64x64xf32> to vector<64x64xf32>
    %cst_61 = arith.constant dense<0.000000e+00> : vector<16x64xf32>
    %110 = tpu.matmul %107, %109, %cst_61 {dimension_numbers = #tpu.dot_dimension_numbers<[1], [0], [0], [1], [0, 0, 1, 1], [], []>} : vector<16x64xf32>, vector<64x64xf32>, vector<16x64xf32> -> vector<16x64xf32>
    %111 = arith.addf %102, %110 : vector<16x64xf32>
    %c7_i32_62 = arith.constant 7 : i32
    %112 = vector.broadcast %c7_i32_62 : i32 to vector<16x64xi32>
    %113 = arith.cmpi eq, %99, %112 : vector<16x64xi32>
    %c15_i32_63 = arith.constant 15 : i32
    %114 = tpu.dynamic_rotate %82 by %c15_i32_63 dim 0 : vector<16x64xf32>, i32 -> vector<16x64xf32>
    %cst_64 = arith.constant 0.000000e+00 : f32
    %115 = vector.broadcast %cst_64 : f32 to vector<16x64xf32>
    %116 = arith.select %113, %115, %114 : vector<16x64xi1>, vector<16x64xf32>
    %c2_65 = arith.constant 2 : index
    %c0_66 = arith.constant 0 : index
    %c0_67 = arith.constant 0 : index
    %117 = vector.load %arg6[%c2_65, %c0_66, %c0_67] : memref<3x64x64xf32, #tpu.memory_space<vmem>>, vector<1x64x64xf32>
    %118 = vector.shape_cast %117 : vector<1x64x64xf32> to vector<64x64xf32>
    %cst_68 = arith.constant dense<0.000000e+00> : vector<16x64xf32>
    %119 = tpu.matmul %116, %118, %cst_68 {dimension_numbers = #tpu.dot_dimension_numbers<[1], [0], [0], [1], [0, 0, 1, 1], [], []>} : vector<16x64xf32>, vector<64x64xf32>, vector<16x64xf32> -> vector<16x64xf32>
    %120 = arith.addf %111, %119 : vector<16x64xf32>
    %c0_69 = arith.constant 0 : index
    %c0_70 = arith.constant 0 : index
    %121 = vector.load %arg7[%c0_69, %c0_70] : memref<1x64xf32, #tpu.memory_space<vmem>>, vector<1x64xf32>
    %122 = vector.broadcast %121 : vector<1x64xf32> to vector<16x64xf32>
    %123 = arith.addf %120, %122 : vector<16x64xf32>
    %124 = arith.addf %82, %123 : vector<16x64xf32>
    %125 = tpu.iota {dimensions = array<i32: 0>} : vector<16x64xi32>
    %c8_i32_71 = arith.constant 8 : i32
    %c0_i32_72 = arith.constant 0 : i32
    %126 = arith.cmpi eq, %c8_i32_71, %c0_i32_72 : i32
    %c1_i32_73 = arith.constant 1 : i32
    %127 = arith.select %126, %c1_i32_73, %c8_i32_71 : i32
    %128 = vector.broadcast %127 : i32 to vector<16x64xi32>
    %129 = arith.remsi %125, %128 : vector<16x64xi32>
    %c0_i32_74 = arith.constant 0 : i32
    %130 = vector.broadcast %c0_i32_74 : i32 to vector<16x64xi32>
    %131 = arith.cmpi ne, %129, %130 : vector<16x64xi32>
    %c0_i32_75 = arith.constant 0 : i32
    %132 = vector.broadcast %c0_i32_75 : i32 to vector<16x64xi32>
    %133 = arith.cmpi slt, %129, %132 : vector<16x64xi32>
    %c0_i32_76 = arith.constant 0 : i32
    %134 = arith.cmpi slt, %127, %c0_i32_76 : i32
    %135 = vector.broadcast %134 : i1 to vector<16x64xi1>
    %136 = vector.broadcast %135 : vector<16x64xi1> to vector<16x64xi1>
    %137 = arith.xori %133, %136 : vector<16x64xi1>
    %138 = arith.andi %137, %131 : vector<16x64xi1>
    %139 = vector.broadcast %127 : i32 to vector<16x64xi32>
    %140 = arith.addi %129, %139 : vector<16x64xi32>
    %141 = arith.select %138, %140, %129 : vector<16x64xi1>, vector<16x64xi32>
    %c1_77 = arith.constant 1 : index
    %c0_78 = arith.constant 0 : index
    %c0_79 = arith.constant 0 : index
    %142 = vector.load %arg8[%c1_77, %c0_78, %c0_79] : memref<3x64x64xf32, #tpu.memory_space<vmem>>, vector<1x64x64xf32>
    %143 = vector.shape_cast %142 : vector<1x64x64xf32> to vector<64x64xf32>
    %cst_80 = arith.constant dense<0.000000e+00> : vector<16x64xf32>
    %144 = tpu.matmul %124, %143, %cst_80 {dimension_numbers = #tpu.dot_dimension_numbers<[1], [0], [0], [1], [0, 0, 1, 1], [], []>} : vector<16x64xf32>, vector<64x64xf32>, vector<16x64xf32> -> vector<16x64xf32>
    %c0_i32_81 = arith.constant 0 : i32
    %145 = vector.broadcast %c0_i32_81 : i32 to vector<16x64xi32>
    %146 = arith.cmpi eq, %141, %145 : vector<16x64xi32>
    %c1_i32_82 = arith.constant 1 : i32
    %147 = tpu.dynamic_rotate %124 by %c1_i32_82 dim 0 : vector<16x64xf32>, i32 -> vector<16x64xf32>
    %cst_83 = arith.constant 0.000000e+00 : f32
    %148 = vector.broadcast %cst_83 : f32 to vector<16x64xf32>
    %149 = arith.select %146, %148, %147 : vector<16x64xi1>, vector<16x64xf32>
    %c0_84 = arith.constant 0 : index
    %c0_85 = arith.constant 0 : index
    %c0_86 = arith.constant 0 : index
    %150 = vector.load %arg8[%c0_84, %c0_85, %c0_86] : memref<3x64x64xf32, #tpu.memory_space<vmem>>, vector<1x64x64xf32>
    %151 = vector.shape_cast %150 : vector<1x64x64xf32> to vector<64x64xf32>
    %cst_87 = arith.constant dense<0.000000e+00> : vector<16x64xf32>
    %152 = tpu.matmul %149, %151, %cst_87 {dimension_numbers = #tpu.dot_dimension_numbers<[1], [0], [0], [1], [0, 0, 1, 1], [], []>} : vector<16x64xf32>, vector<64x64xf32>, vector<16x64xf32> -> vector<16x64xf32>
    %153 = arith.addf %144, %152 : vector<16x64xf32>
    %c7_i32_88 = arith.constant 7 : i32
    %154 = vector.broadcast %c7_i32_88 : i32 to vector<16x64xi32>
    %155 = arith.cmpi eq, %141, %154 : vector<16x64xi32>
    %c15_i32_89 = arith.constant 15 : i32
    %156 = tpu.dynamic_rotate %124 by %c15_i32_89 dim 0 : vector<16x64xf32>, i32 -> vector<16x64xf32>
    %cst_90 = arith.constant 0.000000e+00 : f32
    %157 = vector.broadcast %cst_90 : f32 to vector<16x64xf32>
    %158 = arith.select %155, %157, %156 : vector<16x64xi1>, vector<16x64xf32>
    %c2_91 = arith.constant 2 : index
    %c0_92 = arith.constant 0 : index
    %c0_93 = arith.constant 0 : index
    %159 = vector.load %arg8[%c2_91, %c0_92, %c0_93] : memref<3x64x64xf32, #tpu.memory_space<vmem>>, vector<1x64x64xf32>
    %160 = vector.shape_cast %159 : vector<1x64x64xf32> to vector<64x64xf32>
    %cst_94 = arith.constant dense<0.000000e+00> : vector<16x64xf32>
    %161 = tpu.matmul %158, %160, %cst_94 {dimension_numbers = #tpu.dot_dimension_numbers<[1], [0], [0], [1], [0, 0, 1, 1], [], []>} : vector<16x64xf32>, vector<64x64xf32>, vector<16x64xf32> -> vector<16x64xf32>
    %162 = arith.addf %153, %161 : vector<16x64xf32>
    %c0_95 = arith.constant 0 : index
    %c0_96 = arith.constant 0 : index
    %163 = vector.load %arg9[%c0_95, %c0_96] : memref<1x64xf32, #tpu.memory_space<vmem>>, vector<1x64xf32>
    %164 = vector.broadcast %163 : vector<1x64xf32> to vector<16x64xf32>
    %165 = arith.addf %162, %164 : vector<16x64xf32>
    %166 = arith.addf %124, %165 : vector<16x64xf32>
    %c0_97 = arith.constant 0 : index
    %c0_98 = arith.constant 0 : index
    %167 = vector.load %arg10[%c0_97, %c0_98] : memref<16x64xf32, #tpu.memory_space<vmem>>, vector<16x64xf32>
    tpu.vector_store %arg10[%c0_97, %c0_98], %166 {strides = array<i32>} : memref<16x64xf32, #tpu.memory_space<vmem>>, vector<16x64xf32>,
    return
  }
  func.func @transform_0(%arg0: i32) -> (i32, i32) {
    %c0_i32 = arith.constant 0 : i32
    %c0_i32_0 = arith.constant 0 : i32
    return %arg0, %c0_i32 : i32, i32
  }
  func.func @transform_1(%arg0: i32) -> (i32, i32, i32) {
    %c0_i32 = arith.constant 0 : i32
    %c0_i32_0 = arith.constant 0 : i32
    %c0_i32_1 = arith.constant 0 : i32
    %c0_i32_2 = arith.constant 0 : i32
    return %c0_i32, %c0_i32_0, %c0_i32_1 : i32, i32, i32
  }
  func.func @transform_2(%arg0: i32) -> (i32, i32) {
    %c0_i32 = arith.constant 0 : i32
    %c0_i32_0 = arith.constant 0 : i32
    %c0_i32_1 = arith.constant 0 : i32
    return %c0_i32, %c0_i32_0 : i32, i32
  }
  func.func @transform_3(%arg0: i32) -> (i32, i32, i32) {
    %c0_i32 = arith.constant 0 : i32
    %c0_i32_0 = arith.constant 0 : i32
    %c0_i32_1 = arith.constant 0 : i32
    %c0_i32_2 = arith.constant 0 : i32
    return %c0_i32, %c0_i32_0, %c0_i32_1 : i32, i32, i32
  }
  func.func @transform_4(%arg0: i32) -> (i32, i32) {
    %c0_i32 = arith.constant 0 : i32
    %c0_i32_0 = arith.constant 0 : i32
    %c0_i32_1 = arith.constant 0 : i32
    return %c0_i32, %c0_i32_0 : i32, i32
  }
  func.func @transform_5(%arg0: i32) -> (i32, i32, i32) {
    %c0_i32 = arith.constant 0 : i32
    %c0_i32_0 = arith.constant 0 : i32
    %c0_i32_1 = arith.constant 0 : i32
    %c0_i32_2 = arith.constant 0 : i32
    return %c0_i32, %c0_i32_0, %c0_i32_1 : i32, i32, i32
  }
  func.func @transform_6(%arg0: i32) -> (i32, i32) {
    %c0_i32 = arith.constant 0 : i32
    %c0_i32_0 = arith.constant 0 : i32
    %c0_i32_1 = arith.constant 0 : i32
    return %c0_i32, %c0_i32_0 : i32, i32
  }
  func.func @transform_7(%arg0: i32) -> (i32, i32, i32) {
    %c0_i32 = arith.constant 0 : i32
    %c0_i32_0 = arith.constant 0 : i32
    %c0_i32_1 = arith.constant 0 : i32
    %c0_i32_2 = arith.constant 0 : i32
    return %c0_i32, %c0_i32_0, %c0_i32_1 : i32, i32, i32
  }
  func.func @transform_8(%arg0: i32) -> (i32, i32) {
    %c0_i32 = arith.constant 0 : i32
    %c0_i32_0 = arith.constant 0 : i32
    %c0_i32_1 = arith.constant 0 : i32
    return %c0_i32, %c0_i32_0 : i32, i32
  }
  func.func @transform_9(%arg0: i32) -> (i32, i32) {
    %c0_i32 = arith.constant 0 : i32
    %c0_i32_0 = arith.constant 0 : i32
    return %arg0, %c0_i32 : i32, i32
  }
}

</mosaic_0001>

<bundles_post_ra>
// kernel: tile.23
= control target key start
LH: loop header
LB: loop body
LE: loop exit
PB: predicated region body
PF: predicated region fallthrough
CT: control target
= control target key end

     0   :  { %s22_s0 = inlined_call_operand.vmem [shape: f32[4], index: 0, kind: input, shape index: {}]   ;;  %s23_s1 = inlined_call_operand.vmem [shape: f32[8,4], index: 1, kind: output, shape index: {}]  }
   0x1   :  { %v4_v0 = vld [vmem:[%s22_s0] ss:$0 sm:$0xff] }
   0x2   :  { %5 = vst [vmem:[%s23_s1] sm:$0xff] %v4_v0 }

// kernel: tile.24
= control target key start
LH: loop header
LB: loop body
LE: loop exit
PB: predicated region body
PF: predicated region fallthrough
CT: control target
= control target key end

     0   :  { %s69_s10 = smov 28   ;;  %s70_s11 = smov 20   ;;  %vm3_vm0 = vcmask 31744   ;;  %vm9_vm1 = vcmask 261344   ;;  %vm15_vm2 = vcmask 228544   ;;  %vm21_vm3 = vcmask 195744   ;;  %s113_s0 = inlined_call_operand.vmem [shape: f32[8,4], index: 0, kind: input, shape index: {}]   ;;  %s114_s1 = inlined_call_operand.vmem [shape: f32[1,32], index: 1, kind: output, shape index: {}]  }
   0x1   :  { %v55_v0 = vld [vmem:[%s113_s0 + $0x7] sm:$0x1]   ;;  %v57_v1 = vld [vmem:[%s113_s0 + $0x5] sm:$0x1]   ;;  %v56_v2 = vld [vmem:[%s113_s0 + $0x6] sm:$0x1]  }
   0x2   :  { %7 = vrot.lane.b32.xlu0 %v55_v0, %s69_s10  ;;  %19 = vrot.lane.b32.xlu1 %v57_v1, %s70_s11  ;;  %v58_v3 = vld [vmem:[%s113_s0 + $0x4] sm:$0x1]   ;;  %v2_v4 = vld [vmem:[%s113_s0] sm:$0x1]   ;;  %s71_s18 = smov 24   ;;  %s72_s19 = smov 16  }
   0x3   :  { %4 = vst.msk [vmem:[#allocation0] sm:$0x1] %vm3_vm0, %v2_v4   ;;  %v59_v5 = vld [vmem:[%s113_s0 + $0x3] sm:$0x1]   ;;  %v60_v6 = vld [vmem:[%s113_s0 + $0x2] sm:$0x1]  }
   0x4   :  { %s73_s24 = smov 12   ;;  %s74_s25 = smov 8   ;;  %v61_v7 = vld [vmem:[%s113_s0 + $0x1] sm:$0x1]   ;;  %vm27_vm4 = vcmask 162944   ;;  %vm33_vm5 = vcmask 130144  }
   0x5   :  { %s75_s0 = smov 4   ;;  %vm39_vm6 = vcmask 97344   ;;  %vm45_vm7 = vcmask 64544  }
   0x6   :  { %13 = vrot.lane.b32.xlu0 %v56_v2, %s71_s18  ;;  %25 = vrot.lane.b32.xlu1 %v58_v3, %s72_s19 }
   0xa   :  { %31 = vrot.lane.b32.xlu0 %v59_v5, %s73_s24  ;;  %37 = vrot.lane.b32.xlu1 %v60_v6, %s74_s25 }
   0xe   :  { %43 = vrot.lane.b32.xlu0 %v61_v7, %s75_s0 }
  0x74   :  { %v8_v8 = vpop.permute.xlu0 %7   ;;  %v20_v9 = vpop.permute.xlu1 %19  }
  0x75   :  { %10 = vst.msk [vmem:[#allocation0] sm:$0x1] %vm9_vm1, %v8_v8  }
  0x78   :  { %v14_v10 = vpop.permute.xlu0 %13   ;;  %v26_v11 = vpop.permute.xlu1 %25  }
  0x79   :  { %16 = vst.msk [vmem:[#allocation0] sm:$0x1] %vm15_vm2, %v14_v10  }
  0x7a   :  { %22 = vst.msk [vmem:[#allocation0] sm:$0x1] %vm21_vm3, %v20_v9  }
  0x7b   :  { %28 = vst.msk [vmem:[#allocation0] sm:$0x1] %vm27_vm4, %v26_v11  }
  0x7c   :  { %v32_v12 = vpop.permute.xlu0 %31   ;;  %v38_v13 = vpop.permute.xlu1 %37  }
  0x7d   :  { %34 = vst.msk [vmem:[#allocation0] sm:$0x1] %vm33_vm5, %v32_v12  }
  0x7e   :  { %40 = vst.msk [vmem:[#allocation0] sm:$0x1] %vm39_vm6, %v38_v13  }
  0x80   :  { %v44_v14 = vpop.permute.xlu0 %43  }
  0x81   :  { %46 = vst.msk [vmem:[#allocation0] sm:$0x1] %vm45_vm7, %v44_v14  }
  0x88   :  { %v51_v15 = vld [vmem:[#allocation0] sm:$0x1] }
  0x89   :  { %54 = vst [vmem:[%s114_s1] sm:$0x1] %v51_v15 }

// kernel: tile.28
= control target key start
LH: loop header
LB: loop body
LE: loop exit
PB: predicated region body
PF: predicated region fallthrough
CT: control target
= control target key end

     0   :  { %s22_s0 = inlined_call_operand.vmem [shape: f32[8], index: 0, kind: input, shape index: {}]   ;;  %s23_s1 = inlined_call_operand.vmem [shape: f32[8,8], index: 1, kind: output, shape index: {}]  }
   0x1   :  { %v4_v0 = vld [vmem:[%s22_s0] ss:$0 sm:$0xff] }
   0x2   :  { %5 = vst [vmem:[%s23_s1] sm:$0xff] %v4_v0 }

// kernel: tile.29
= control target key start
LH: loop header
LB: loop body
LE: loop exit
PB: predicated region body
PF: predicated region fallthrough
CT: control target
= control target key end

     0   :  { %s69_s10 = smov 56   ;;  %s70_s11 = smov 40   ;;  %vm3_vm0 = vcmask 64512   ;;  %vm9_vm1 = vcmask 523712   ;;  %vm15_vm2 = vcmask 458112   ;;  %vm21_vm3 = vcmask 392512   ;;  %s113_s0 = inlined_call_operand.vmem [shape: f32[8,8], index: 0, kind: input, shape index: {}]   ;;  %s114_s1 = inlined_call_operand.vmem [shape: f32[1,64], index: 1, kind: output, shape index: {}]  }
   0x1   :  { %v55_v0 = vld [vmem:[%s113_s0 + $0x7] sm:$0x1]   ;;  %v57_v1 = vld [vmem:[%s113_s0 + $0x5] sm:$0x1]   ;;  %v56_v2 = vld [vmem:[%s113_s0 + $0x6] sm:$0x1]  }
   0x2   :  { %7 = vrot.lane.b32.xlu0 %v55_v0, %s69_s10  ;;  %19 = vrot.lane.b32.xlu1 %v57_v1, %s70_s11  ;;  %v58_v3 = vld [vmem:[%s113_s0 + $0x4] sm:$0x1]   ;;  %v2_v4 = vld [vmem:[%s113_s0] sm:$0x1]   ;;  %s71_s18 = smov 48   ;;  %s72_s19 = smov 32  }
   0x3   :  { %4 = vst.msk [vmem:[#allocation0] sm:$0x1] %vm3_vm0, %v2_v4   ;;  %v59_v5 = vld [vmem:[%s113_s0 + $0x3] sm:$0x1]   ;;  %v60_v6 = vld [vmem:[%s113_s0 + $0x2] sm:$0x1]  }
   0x4   :  { %s73_s24 = smov 24   ;;  %s74_s25 = smov 16   ;;  %v61_v7 = vld [vmem:[%s113_s0 + $0x1] sm:$0x1]   ;;  %vm27_vm4 = vcmask 326912   ;;  %vm33_vm5 = vcmask 261312  }
   0x5   :  { %s75_s0 = smov 8   ;;  %vm39_vm6 = vcmask 195712   ;;  %vm45_vm7 = vcmask 130112  }
   0x6   :  { %13 = vrot.lane.b32.xlu0 %v56_v2, %s71_s18  ;;  %25 = vrot.lane.b32.xlu1 %v58_v3, %s72_s19 }
   0xa   :  { %31 = vrot.lane.b32.xlu0 %v59_v5, %s73_s24  ;;  %37 = vrot.lane.b32.xlu1 %v60_v6, %s74_s25 }
   0xe   :  { %43 = vrot.lane.b32.xlu0 %v61_v7, %s75_s0 }
  0x74   :  { %v8_v8 = vpop.permute.xlu0 %7   ;;  %v20_v9 = vpop.permute.xlu1 %19  }
  0x75   :  { %10 = vst.msk [vmem:[#allocation0] sm:$0x1] %vm9_vm1, %v8_v8  }
  0x78   :  { %v14_v10 = vpop.permute.xlu0 %13   ;;  %v26_v11 = vpop.permute.xlu1 %25  }
  0x79   :  { %16 = vst.msk [vmem:[#allocation0] sm:$0x1] %vm15_vm2, %v14_v10  }
  0x7a   :  { %22 = vst.msk [vmem:[#allocation0] sm:$0x1] %vm21_vm3, %v20_v9  }
  0x7b   :  { %28 = vst.msk [vmem:[#allocation0] sm:$0x1] %vm27_vm4, %v26_v11  }
  0x7c   :  { %v32_v12 = vpop.permute.xlu0 %31   ;;  %v38_v13 = vpop.permute.xlu1 %37  }
  0x7d   :  { %34 = vst.msk [vmem:[#allocation0] sm:$0x1] %vm33_vm5, %v32_v12  }
  0x7e   :  { %40 = vst.msk [vmem:[#allocation0] sm:$0x1] %vm39_vm6, %v38_v13  }
  0x80   :  { %v44_v14 = vpop.permute.xlu0 %43  }
  0x81   :  { %46 = vst.msk [vmem:[#allocation0] sm:$0x1] %vm45_vm7, %v44_v14  }
  0x88   :  { %v51_v15 = vld [vmem:[#allocation0] sm:$0x1] }
  0x89   :  { %54 = vst [vmem:[%s114_s1] sm:$0x1] %v51_v15 }

// kernel: _res_conv_stack_forward.1
= control target key start
LH: loop header
LB: loop body
LE: loop exit
PB: predicated region body
PF: predicated region fallthrough
CT: control target
= control target key end

     0   :  { %v34_v16 = vlaneseq  ;;  %vm380_vm10 = vcmask 261120   ;;  %vm669_vm11 = vcmask 523264   ;;  %s2268_s1 = inlined_call_operand.vmem [shape: f32[3,128,32], index: 1, kind: input, shape index: {}]   ;;  %s2269_s0 = inlined_call_operand.vmem [shape: f32[16,128], index: 0, kind: input, shape index: {}]   ;;  %s2270_s3 = inlined_call_operand.vmem [shape: f32[3,32,64], index: 3, kind: input, shape index: {}]   ;;  %s2271_s2 = inlined_call_operand.vmem [shape: f32[1,32], index: 2, kind: input, shape index: {}]   ;;  %s2272_s5 = inlined_call_operand.vmem [shape: f32[3,64,64], index: 5, kind: input, shape index: {}]   ;;  %s2273_s4 = inlined_call_operand.vmem [shape: f32[1,64], index: 4, kind: input, shape index: {}]   ;;  %s2274_s7 = inlined_call_operand.vmem [shape: f32[3,64,64], index: 7, kind: input, shape index: {}]   ;;  %s2275_s6 = inlined_call_operand.vmem [shape: f32[1,64], index: 6, kind: input, shape index: {}]   ;;  %s2276_s8 = inlined_call_operand.vmem [shape: f32[1,64], index: 8, kind: input, shape index: {}]   ;;  %s2277_s9 = inlined_call_operand.vmem [shape: f32[16,64], index: 9, kind: output, shape index: {}]  }
   0x1   :  { %v102_v0 = vld [vmem:[%s2268_s1 + $0x78] sm:$0xff]  ;;  %v101_v2 = vld [vmem:[%s2268_s1 + $0x70] sm:$0xff]  ;;  %v100_v4 = vld [vmem:[%s2268_s1 + $0x68] sm:$0xff] }
   0x2   :  { %v1256_v1 = vld [vmem:[%s2268_s1 + $0xf8] sm:$0xff]  ;;  %1475 = vmatprep.subr.mxu0 %v102_v0  ;;  %v1255_v3 = vld [vmem:[%s2268_s1 + $0xf0] sm:$0xff]  ;;  %v1254_v5 = vld [vmem:[%s2268_s1 + $0xe8] sm:$0xff]  ;;  %v1837_v21 = vshrl.u32 %v34_v16, 7 }
   0x3   :  { %1510 = vmatprep.subr.mxu1 %v1256_v1  ;;  %1476 = vmatpush3.msra.mxu0 %v102_v0  ;;  %v99_v6 = vld [vmem:[%s2268_s1 + $0x60] sm:$0xff]  ;;  %v98_v8 = vld [vmem:[%s2268_s1 + $0x58] sm:$0xff]  ;;  %v97_v10 = vld [vmem:[%s2268_s1 + $0x50] sm:$0xff] }
   0x4   :  { %1511 = vmatpush3.msra.mxu1 %v1256_v1  ;;  %1477 = vmatprep.subr.mxu0 %v101_v2  ;;  %v1253_v7 = vld [vmem:[%s2268_s1 + $0xe0] sm:$0xff]  ;;  %v1252_v9 = vld [vmem:[%s2268_s1 + $0xd8] sm:$0xff]  ;;  %v1251_v11 = vld [vmem:[%s2268_s1 + $0xd0] sm:$0xff]  ;;  %v1852_v26 = vadd.s32 8, %v1837_v21  ;;  %v41_v31 = vand.u32 7, %v1837_v21  ;;  %vm82_vm1 = vcmp.lt.s32.totalorder %v1837_v21, 1 }
   0x5   :  { %1512 = vmatprep.subr.mxu1 %v1255_v3  ;;  %1478 = vmatpush3.msra.mxu0 %v101_v2  ;;  %v96_v12 = vld [vmem:[%s2268_s1 + $0x48] sm:$0xff]  ;;  %v95_v14 = vld [vmem:[%s2268_s1 + $0x40] sm:$0xff]  ;;  %v94_v17 = vld [vmem:[%s2268_s1 + $0x38] sm:$0xff]  ;;  %vm257_vm5 = vcmp.lt.s32.totalorder %v1837_v21, 7 }
   0x6   :  { %1513 = vmatpush3.msra.mxu1 %v1255_v3  ;;  %1479 = vmatprep.subr.mxu0 %v100_v4  ;;  %v1250_v13 = vld [vmem:[%s2268_s1 + $0xc8] sm:$0xff]  ;;  %v1249_v15 = vld [vmem:[%s2268_s1 + $0xc0] sm:$0xff]  ;;  %v1248_v18 = vld [vmem:[%s2268_s1 + $0xb8] sm:$0xff]  ;;  %v48_v34 = vand.u32 7, %v1852_v26  ;;  %vm1886_vm0 = vcmp.eq.s32.totalorder %v41_v31, 0  ;;  %vm1909_vm4 = vcmp.eq.s32.totalorder %v41_v31, 7 }
   0x7   :  { %1514 = vmatprep.subr.mxu1 %v1254_v5  ;;  %1480 = vmatpush3.msra.mxu0 %v100_v4  ;;  %v93_v19 = vld [vmem:[%s2268_s1 + $0x30] sm:$0xff]  ;;  %v92_v22 = vld [vmem:[%s2268_s1 + $0x28] sm:$0xff]  ;;  %v91_v24 = vld [vmem:[%s2268_s1 + $0x20] sm:$0xff] }
   0x8   :  { %1515 = vmatpush3.msra.mxu1 %v1254_v5  ;;  %1481 = vmatprep.subr.mxu0 %v99_v6  ;;  %v1247_v20 = vld [vmem:[%s2268_s1 + $0xb0] sm:$0xff]  ;;  %v1246_v23 = vld [vmem:[%s2268_s1 + $0xa8] sm:$0xff]  ;;  %v1245_v25 = vld [vmem:[%s2268_s1 + $0xa0] sm:$0xff]  ;;  %vm1899_vm2 = vcmp.eq.s32.totalorder %v48_v34, 0  ;;  %vm1975_vm8 = vcmp.eq.s32.totalorder %v48_v34, 7 }
   0x9   :  { %1516 = vmatprep.subr.mxu1 %v1253_v7  ;;  %1482 = vmatpush3.msra.mxu0 %v99_v6  ;;  %v90_v27 = vld [vmem:[%s2268_s1 + $0x18] sm:$0xff]  ;;  %v1863_v29 = vld [vmem:[%s2269_s0] sm:$0xff]  ;;  %v1868_v30 = vld [vmem:[%s2269_s0 + $0x8] sm:$0xff] }
   0xa   :  { %1517 = vmatpush3.msra.mxu1 %v1253_v7  ;;  %1483 = vmatprep.subr.mxu0 %v98_v8  ;;  %v1244_v28 = vld [vmem:[%s2268_s1 + $0x98] sm:$0xff]  ;;  %v89_v32 = vld [vmem:[%s2268_s1 + $0x10] sm:$0xff]  ;;  %v80_v35 = vrot.slane %v1863_v29, 7  ;;  %v81_v36 = vrot.slane %v1868_v30, 7  ;;  %v88_v37 = vld [vmem:[%s2268_s1 + $0x8] sm:$0xff]  ;;  %v255_v43 = vrot.slane %v1863_v29, 1 }
   0xb   :  { %1518 = vmatprep.subr.mxu1 %v1252_v9  ;;  %1484 = vmatpush3.msra.mxu0 %v98_v8  ;;  %v1243_v33 = vld [vmem:[%s2268_s1 + $0x90] sm:$0xff]  ;;  %v1242_v38 = vld [vmem:[%s2268_s1 + $0x88] sm:$0xff]  ;;  %v87_v40 = vld [vmem:[%s2268_s1] sm:$0xff]  ;;  %v256_v44 = vrot.slane %v1868_v30, 1 }
   0xc   :  { %1519 = vmatpush3.msra.mxu1 %v1252_v9  ;;  %1485 = vmatprep.subr.mxu0 %v97_v10  ;;  %v1241_v41 = vld [vmem:[%s2268_s1 + $0x80] sm:$0xff]  ;;  %v84_v45 = vsel %vm82_vm1, %v81_v36, %v80_v35  ;;  %vm1257_vm3 = vmneg %vm1886_vm0  ;;  %v83_v47 = vsel %vm82_vm1, %v80_v35, %v81_v36  ;;  %v1276_v48 = vld [vmem:[%s2268_s1 + $0x178] sm:$0xff] }
   0xd   :  { %1520 = vmatprep.subr.mxu1 %v1251_v11  ;;  %1486 = vmatpush3.msra.mxu0 %v97_v10  ;;  %vm1259_vm6 = vmneg %vm1899_vm2  ;;  %v258_v49 = vsel %vm257_vm5, %v255_v43, %v256_v44  ;;  %v1275_v50 = vld [vmem:[%s2268_s1 + $0x170] sm:$0xff]  ;;  %v1274_v51 = vld [vmem:[%s2268_s1 + $0x168] sm:$0xff]  ;;  %v259_v2 = vsel %vm257_vm5, %v256_v44, %v255_v43 }
   0xe   :  { %1521 = vmatpush3.msra.mxu1 %v1251_v11  ;;  %1487 = vmatprep.subr.mxu0 %v96_v12  ;;  %vm1277_vm7 = vmneg %vm1909_vm4  ;;  %v1273_v52 = vld [vmem:[%s2268_s1 + $0x160] sm:$0xff]  ;;  %v1272_v53 = vld [vmem:[%s2268_s1 + $0x158] sm:$0xff] }
   0xf   :  { %1522 = vmatprep.subr.mxu1 %v1250_v13  ;;  %1488 = vmatpush3.msra.mxu0 %v96_v12  ;;  %v1271_v54 = vld [vmem:[%s2268_s1 + $0x150] sm:$0xff]  ;;  %v1270_v55 = vld [vmem:[%s2268_s1 + $0x148] sm:$0xff]  ;;  %v1269_v56 = vld [vmem:[%s2268_s1 + $0x140] sm:$0xff] }
  0x10   :  { %1523 = vmatpush3.msra.mxu1 %v1250_v13  ;;  %1489 = vmatprep.subr.mxu0 %v95_v14  ;;  %v1268_v57 = vld [vmem:[%s2268_s1 + $0x138] sm:$0xff]  ;;  %v1267_v58 = vld [vmem:[%s2268_s1 + $0x130] sm:$0xff]  ;;  %v1266_v59 = vld [vmem:[%s2268_s1 + $0x128] sm:$0xff] }
  0x11   :  { %1524 = vmatprep.subr.mxu1 %v1249_v15  ;;  %1490 = vmatpush3.msra.mxu0 %v95_v14  ;;  %v1265_v60 = vld [vmem:[%s2268_s1 + $0x120] sm:$0xff]  ;;  %v1264_v61 = vld [vmem:[%s2268_s1 + $0x118] sm:$0xff]  ;;  %v1263_v62 = vld [vmem:[%s2268_s1 + $0x110] sm:$0xff] }
  0x12   :  { %1525 = vmatpush3.msra.mxu1 %v1249_v15  ;;  %1491 = vmatprep.subr.mxu0 %v94_v17  ;;  %v1262_v63 = vld [vmem:[%s2268_s1 + $0x108] sm:$0xff]  ;;  %v1261_v1 = vld [vmem:[%s2268_s1 + $0x100] sm:$0xff]  ;;  %vm1279_vm9 = vmneg %vm1975_vm8 }
  0x13   :  { %1526 = vmatprep.subr.mxu1 %v1248_v18  ;;  %1492 = vmatpush3.msra.mxu0 %v94_v17  ;;  %v379_v3 = vld [vmem:[%s2270_s3 + $0x18] sm:$0xff]  ;;  %v378_v4 = vld [vmem:[%s2270_s3 + $0x10] sm:$0xff]  ;;  %v377_v5 = vld [vmem:[%s2270_s3 + $0x8] sm:$0xff] }
  0x14   :  { %1527 = vmatpush3.msra.mxu1 %v1248_v18  ;;  %1493 = vmatprep.subr.mxu0 %v93_v19  ;;  %v376_v6 = vld [vmem:[%s2270_s3] sm:$0xff]  ;;  %v1285_v7 = vld [vmem:[%s2270_s3 + $0x38] sm:$0xff]  ;;  %v1292_v35 = vld [vmem:[%s2270_s3 + $0x50] sm:$0xff] }
  0x15   :  { %1528 = vmatprep.subr.mxu1 %v1247_v20  ;;  %1494 = vmatpush3.msra.mxu0 %v93_v19  ;;  %v1281_v14 = vld [vmem:[%s2271_s2] ss:$0 sm:$0xff]  ;;  %v1304_v43 = vld [vmem:[%s2272_s5 + $0x78] sm:$0xff]  ;;  %v1303_v44 = vld [vmem:[%s2272_s5 + $0x70] sm:$0xff] }
  0x16   :  { %1529 = vmatpush3.msra.mxu1 %v1247_v20  ;;  %1495 = vmatprep.subr.mxu0 %v92_v22  ;;  %v1337_v39 = vld [vmem:[%s2274_s7 + $0xa8] sm:$0xff]  ;;  %v1336_v42 = vld [vmem:[%s2274_s7 + $0xa0] sm:$0xff]  ;;  %v1335_v46 = vld [vmem:[%s2274_s7 + $0x98] sm:$0xff] }
  0x17   :  { %1530 = vmatprep.subr.mxu1 %v1246_v23  ;;  %1496 = vmatpush3.msra.mxu0 %v92_v22 }
  0x18   :  { %1531 = vmatpush3.msra.mxu1 %v1246_v23  ;;  %1497 = vmatprep.subr.mxu0 %v91_v24 }
  0x19   :  { %1532 = vmatprep.subr.mxu1 %v1245_v25  ;;  %1498 = vmatpush3.msra.mxu0 %v91_v24 }
  0x1a   :  { %1533 = vmatpush3.msra.mxu1 %v1245_v25  ;;  %1499 = vmatprep.subr.mxu0 %v90_v27 }
  0x1b   :  { %1534 = vmatprep.subr.mxu1 %v1244_v28  ;;  %1500 = vmatpush3.msra.mxu0 %v90_v27 }
  0x1c   :  { %1535 = vmatpush3.msra.mxu1 %v1244_v28  ;;  %1501 = vmatprep.subr.mxu0 %v89_v32  ;;  %v1284_v28 = vld [vmem:[%s2270_s3 + $0x30] sm:$0xff] }
  0x1d   :  { %1536 = vmatprep.subr.mxu1 %v1243_v33  ;;  %1502 = vmatpush3.msra.mxu0 %v89_v32  ;;  %v1282_v32 = vld [vmem:[%s2270_s3 + $0x20] sm:$0xff] }
  0x1e   :  { %1537 = vmatpush3.msra.mxu1 %v1243_v33  ;;  %1503 = vmatprep.subr.mxu0 %v88_v37  ;;  %v1293_v33 = vld [vmem:[%s2270_s3 + $0x58] sm:$0xff] }
  0x1f   :  { %1538 = vmatprep.subr.mxu1 %v1242_v38  ;;  %1504 = vmatpush3.msra.mxu0 %v88_v37  ;;  %v1291_v37 = vld [vmem:[%s2270_s3 + $0x48] sm:$0xff] }
  0x20   :  { %1539 = vmatpush3.msra.mxu1 %v1242_v38  ;;  %1505 = vmatprep.subr.mxu0 %v87_v40  ;;  %v1290_v38 = vld [vmem:[%s2270_s3 + $0x40] sm:$0xff] }
  0x21   :  { %1540 = vmatprep.subr.mxu1 %v1241_v41  ;;  %1506 = vmatpush3.msra.mxu0 %v87_v40 }
  0x22   :  { %1507 = vmatprep.mubr.msk.f32.mxu0 %vm1257_vm3, %v84_v45  ;;  %1541 = vmatpush3.msra.mxu1 %v1241_v41  ;;  %v668_v45 = vld [vmem:[%s2272_s5 + $0x38] sm:$0xff] }
  0x23   :  { %1542 = vmatprep.mubr.f32.mxu1 %v1863_v29  ;;  %1508 = vmatmul.mubr.msk.f32.vlgmr.msra.gmra.mxu0 %vm1259_vm6, %v83_v47  ;;  %v1302_v47 = vld [vmem:[%s2272_s5 + $0x68] sm:$0xff] }
  0x24   :  { %1543 = vmatmul.mubr.f32.vlgmr.msra.gmra.mxu1 %v1868_v30  ;;  %1545 = vmatprep.subr.mxu0 %v1276_v48  ;;  %v1283_v30 = vld [vmem:[%s2270_s3 + $0x28] sm:$0xff] }
  0x25   :  { %1577 = vmatprep.mubr.msk.f32.mxu0 %vm1277_vm7, %v258_v49  ;;  %1546 = vmatpush3.msra.mxu0 %v1276_v48  ;;  %v667_v48 = vld [vmem:[%s2272_s5 + $0x30] sm:$0xff]  ;;  %v1301_v49 = vld [vmem:[%s2272_s5 + $0x60] sm:$0xff] }
  0x26   :  { %1547 = vmatprep.subr.mxu0 %v1275_v50  ;;  %1580 = vmatprep.subr.mxu1 %v379_v3 }
  0x27   :  { %1548 = vmatpush3.msra.mxu0 %v1275_v50  ;;  %1581 = vmatpush3.msra.mxu1 %v379_v3  ;;  %v666_v50 = vld [vmem:[%s2272_s5 + $0x28] sm:$0xff] }
  0x28   :  { %1549 = vmatprep.subr.mxu0 %v1274_v51  ;;  %1582 = vmatprep.subr.mxu1 %v378_v4 }
  0x29   :  { %1550 = vmatpush3.msra.mxu0 %v1274_v51  ;;  %1583 = vmatpush3.msra.mxu1 %v378_v4  ;;  %v1300_v51 = vld [vmem:[%s2272_s5 + $0x58] sm:$0xff]  ;;  %v1296_v4 = vld [vmem:[%s2273_s4] ss:$0 sm:$0xff] }
  0x2a   :  { %1551 = vmatprep.subr.mxu0 %v1273_v52  ;;  %1584 = vmatprep.subr.mxu1 %v377_v5 }
  0x2b   :  { %1552 = vmatpush3.msra.mxu0 %v1273_v52  ;;  %1585 = vmatpush3.msra.mxu1 %v377_v5  ;;  %v665_v52 = vld [vmem:[%s2272_s5 + $0x20] sm:$0xff] }
  0x2c   :  { %1553 = vmatprep.subr.mxu0 %v1272_v53  ;;  %1586 = vmatprep.subr.mxu1 %v376_v6 }
  0x2d   :  { %1554 = vmatpush3.msra.mxu0 %v1272_v53  ;;  %1587 = vmatpush3.msra.mxu1 %v376_v6  ;;  %v1299_v53 = vld [vmem:[%s2272_s5 + $0x50] sm:$0xff] }
  0x2e   :  { %1555 = vmatprep.subr.mxu0 %v1271_v54  ;;  %1591 = vmatprep.subr.mxu1 %v1285_v7 }
  0x2f   :  { %1556 = vmatpush3.msra.mxu0 %v1271_v54  ;;  %v664_v54 = vld [vmem:[%s2272_s5 + $0x18] sm:$0xff] }
  0x30   :  { %1557 = vmatprep.subr.mxu0 %v1270_v55 }
  0x31   :  { %1558 = vmatpush3.msra.mxu0 %v1270_v55  ;;  %v1298_v55 = vld [vmem:[%s2272_s5 + $0x48] sm:$0xff] }
  0x32   :  { %1559 = vmatprep.subr.mxu0 %v1269_v56 }
  0x33   :  { %1560 = vmatpush3.msra.mxu0 %v1269_v56  ;;  %v663_v56 = vld [vmem:[%s2272_s5 + $0x10] sm:$0xff] }
  0x34   :  { %1561 = vmatprep.subr.mxu0 %v1268_v57 }
  0x35   :  { %1562 = vmatpush3.msra.mxu0 %v1268_v57  ;;  %v1297_v57 = vld [vmem:[%s2272_s5 + $0x40] sm:$0xff] }
  0x36   :  { %1563 = vmatprep.subr.mxu0 %v1267_v58 }
  0x37   :  { %1564 = vmatpush3.msra.mxu0 %v1267_v58  ;;  %v662_v58 = vld [vmem:[%s2272_s5 + $0x8] sm:$0xff] }
  0x38   :  { %1565 = vmatprep.subr.mxu0 %v1266_v59 }
  0x39   :  { %1566 = vmatpush3.msra.mxu0 %v1266_v59  ;;  %v661_v59 = vld [vmem:[%s2272_s5] sm:$0xff] }
  0x3a   :  { %1567 = vmatprep.subr.mxu0 %v1265_v60 }
  0x3b   :  { %1568 = vmatpush3.msra.mxu0 %v1265_v60  ;;  %v1316_v60 = vld [vmem:[%s2272_s5 + $0xb8] sm:$0xff] }
  0x3c   :  { %1569 = vmatprep.subr.mxu0 %v1264_v61 }
  0x3d   :  { %1570 = vmatpush3.msra.mxu0 %v1264_v61 }
  0x3e   :  { %1571 = vmatprep.subr.mxu0 %v1263_v62 }
  0x3f   :  { %1572 = vmatpush3.msra.mxu0 %v1263_v62 }
  0x40   :  { %1573 = vmatprep.subr.mxu0 %v1262_v63 }
  0x41   :  { %1574 = vmatpush3.msra.mxu0 %v1262_v63 }
  0x42   :  { %1575 = vmatprep.subr.mxu0 %v1261_v1 }
  0x43   :  { %1576 = vmatpush3.msra.mxu0 %v1261_v1 }
  0x44   :  { %1578 = vmatmul.mubr.msk.f32.vlgmr.msra.gmra.mxu0 %vm1279_vm9, %v259_v2  ;;  %1632 = vmatprep.subr.mxu0 %v1304_v43 }
  0x45   :  { %1633 = vmatpush3.msra.mxu0 %v1304_v43  ;;  %v959_v43 = vld [vmem:[%s2274_s7 + $0x18] sm:$0xff] }
  0x46   :  { %1634 = vmatprep.subr.mxu0 %v1303_v44 }
  0x47   :  { %1635 = vmatpush3.msra.mxu0 %v1303_v44  ;;  %v1321_v44 = vld [vmem:[%s2274_s7 + $0x48] sm:$0xff] }
  0x48   :  { %1636 = vmatprep.subr.mxu0 %v1302_v47 }
  0x49   :  { %1637 = vmatpush3.msra.mxu0 %v1302_v47  ;;  %v1320_v47 = vld [vmem:[%s2274_s7 + $0x40] sm:$0xff] }
  0x4a   :  { %1638 = vmatprep.subr.mxu0 %v1301_v49 }
  0x4b   :  { %1639 = vmatpush3.msra.mxu0 %v1301_v49  ;;  %v956_v49 = vld [vmem:[%s2274_s7] sm:$0xff] }
  0x4c   :  { %1640 = vmatprep.subr.mxu0 %v1300_v51 }
  0x4d   :  { %1641 = vmatpush3.msra.mxu0 %v1300_v51 }
  0x4e   :  { %1642 = vmatprep.subr.mxu0 %v1299_v53 }
  0x4f   :  { %1643 = vmatpush3.msra.mxu0 %v1299_v53 }
  0x50   :  { %1644 = vmatprep.subr.mxu0 %v1298_v55 }
  0x51   :  { %1645 = vmatpush3.msra.mxu0 %v1298_v55 }
  0x52   :  { %1646 = vmatprep.subr.mxu0 %v1297_v57 }
  0x53   :  { %1647 = vmatpush3.msra.mxu0 %v1297_v57  ;;  %v1319_v57 = vld [vmem:[%s2275_s6] ss:$0 sm:$0xff] }
  0xe3   :  { %v1509_v8 = vpop.f32.mrf.mxu0 }
  0xe4   :  { %v1544_v9 = vpop.f32.mrf.mxu1 }
  0xe5   :  { %v169_v10 = vpop.f32.mrf.mxu0  ;;  %v250_v12 = vadd.f32 %v1544_v9, %v1509_v8 }
  0xe6   :  { %v244_v11 = vpop.f32.mrf.mxu1 }
  0xe7   :  { %v245_v15 = vadd.f32 %v244_v11, %v169_v10 }
 0x104   :  { %v1579_v13 = vpop.f32.mrf.mxu0 }
 0x105   :  { %v355_v16 = vadd.f32 %v1579_v13, %v250_v12 }
 0x106   :  { %v345_v17 = vpop.f32.mrf.mxu0 }
 0x107   :  { %v364_v18 = vadd.f32 %v1281_v14, %v355_v16  ;;  %v354_v19 = vadd.f32 %v345_v17, %v245_v15 }
 0x109   :  { %v363_v20 = vadd.f32 %v1281_v14, %v354_v19  ;;  %v371_v22 = vrot.slane %v364_v18, 7  ;;  %v544_v31 = vrot.slane %v364_v18, 1 }
 0x10b   :  { %v370_v23 = vrot.slane %v363_v20, 7  ;;  %v543_v29 = vrot.slane %v363_v20, 1 }
 0x10d   :  { %v373_v24 = vsel %vm82_vm1, %v371_v22, %v370_v23  ;;  %v372_v25 = vsel %vm82_vm1, %v370_v23, %v371_v22  ;;  %v545_v34 = vsel %vm257_vm5, %v543_v29, %v544_v31  ;;  %v546_v40 = vsel %vm257_vm5, %v544_v31, %v543_v29  ;;  %v1314_v23 = vld [vmem:[%s2272_s5 + $0xa8] sm:$0xff]  ;;  %v1327_v31 = vld [vmem:[%s2274_s7 + $0x78] sm:$0xff] }
 0x10e   :  { %v374_v26 = vsel %vm1886_vm0, 0.0, %v373_v24  ;;  %v375_v27 = vsel %vm1899_vm2, 0.0, %v372_v25  ;;  %v547_v36 = vsel %vm1909_vm4, 0.0, %v545_v34  ;;  %v548_v41 = vsel %vm1975_vm8, 0.0, %v546_v40  ;;  %v1313_v24 = vld [vmem:[%s2272_s5 + $0xa0] sm:$0xff]  ;;  %v1312_v25 = vld [vmem:[%s2272_s5 + $0x98] sm:$0xff] }
 0x10f   :  { %1588 = vmatprep.mubr.msk.f32.mxu1 %vm380_vm10, %v374_v26  ;;  %v1311_v26 = vld [vmem:[%s2272_s5 + $0x90] sm:$0xff]  ;;  %v960_v40 = vld [vmem:[%s2274_s7 + $0x20] sm:$0xff] }
 0x110   :  { %1589 = vmatmul.mubr.msk.f32.vlgmr.msra.gmra.mxu1 %vm380_vm10, %v375_v27  ;;  %v1310_v27 = vld [vmem:[%s2272_s5 + $0x88] sm:$0xff]  ;;  %v962_v34 = vld [vmem:[%s2274_s7 + $0x30] sm:$0xff] }
 0x111   :  { %1592 = vmatpush3.msra.mxu1 %v1285_v7  ;;  %1599 = vmatprep.mubr.msk.f32.mxu1 %vm380_vm10, %v363_v20  ;;  %v1315_v20 = vld [vmem:[%s2272_s5 + $0xb0] sm:$0xff] }
 0x112   :  { %1593 = vmatprep.subr.mxu1 %v1284_v28 }
 0x113   :  { %1594 = vmatpush3.msra.mxu1 %v1284_v28  ;;  %v1309_v28 = vld [vmem:[%s2272_s5 + $0x80] sm:$0xff] }
 0x114   :  { %1595 = vmatprep.subr.mxu1 %v1283_v30 }
 0x115   :  { %1596 = vmatpush3.msra.mxu1 %v1283_v30 }
 0x116   :  { %1597 = vmatprep.subr.mxu1 %v1282_v32 }
 0x117   :  { %1598 = vmatpush3.msra.mxu1 %v1282_v32  ;;  %v1326_v32 = vld [vmem:[%s2274_s7 + $0x70] sm:$0xff] }
 0x118   :  { %1600 = vmatmul.mubr.msk.f32.vlgmr.msra.gmra.mxu1 %vm380_vm10, %v364_v18  ;;  %1602 = vmatprep.subr.mxu1 %v1293_v33 }
 0x119   :  { %1603 = vmatpush3.msra.mxu1 %v1293_v33  ;;  %1610 = vmatprep.mubr.msk.f32.mxu1 %vm380_vm10, %v547_v36  ;;  %v963_v33 = vld [vmem:[%s2274_s7 + $0x38] sm:$0xff]  ;;  %v1324_v36 = vld [vmem:[%s2274_s7 + $0x60] sm:$0xff] }
 0x11a   :  { %1604 = vmatprep.subr.mxu1 %v1292_v35  ;;  %1670 = vmatprep.subr.mxu0 %v963_v33 }
 0x11b   :  { %1605 = vmatpush3.msra.mxu1 %v1292_v35  ;;  %v1325_v35 = vld [vmem:[%s2274_s7 + $0x68] sm:$0xff] }
 0x11c   :  { %1606 = vmatprep.subr.mxu1 %v1291_v37 }
 0x11d   :  { %1607 = vmatpush3.msra.mxu1 %v1291_v37  ;;  %v961_v37 = vld [vmem:[%s2274_s7 + $0x28] sm:$0xff] }
 0x11e   :  { %1608 = vmatprep.subr.mxu1 %v1290_v38 }
 0x11f   :  { %1609 = vmatpush3.msra.mxu1 %v1290_v38  ;;  %v1323_v38 = vld [vmem:[%s2274_s7 + $0x58] sm:$0xff] }
 0x120   :  { %1611 = vmatmul.mubr.msk.f32.vlgmr.msra.gmra.mxu1 %vm380_vm10, %v548_v41  ;;  %1613 = vmatprep.subr.mxu1 %v668_v45  ;;  %v1322_v41 = vld [vmem:[%s2274_s7 + $0x50] sm:$0xff] }
 0x121   :  { %1614 = vmatpush3.msra.mxu1 %v668_v45  ;;  %v958_v45 = vld [vmem:[%s2274_s7 + $0x10] sm:$0xff] }
 0x122   :  { %1615 = vmatprep.subr.mxu1 %v667_v48 }
 0x123   :  { %1616 = vmatpush3.msra.mxu1 %v667_v48  ;;  %v957_v48 = vld [vmem:[%s2274_s7 + $0x8] sm:$0xff] }
 0x124   :  { %1617 = vmatprep.subr.mxu1 %v666_v50 }
 0x125   :  { %1618 = vmatpush3.msra.mxu1 %v666_v50  ;;  %v1339_v50 = vld [vmem:[%s2274_s7 + $0xb8] sm:$0xff] }
 0x126   :  { %1619 = vmatprep.subr.mxu1 %v665_v52 }
 0x127   :  { %1620 = vmatpush3.msra.mxu1 %v665_v52 }
 0x128   :  { %1621 = vmatprep.subr.mxu1 %v664_v54 }
 0x129   :  { %1622 = vmatpush3.msra.mxu1 %v664_v54 }
 0x12a   :  { %1623 = vmatprep.subr.mxu1 %v663_v56 }
 0x12b   :  { %1624 = vmatpush3.msra.mxu1 %v663_v56 }
 0x12c   :  { %1625 = vmatprep.subr.mxu1 %v662_v58 }
 0x12d   :  { %1626 = vmatpush3.msra.mxu1 %v662_v58 }
 0x12e   :  { %1627 = vmatprep.subr.mxu1 %v661_v59 }
 0x12f   :  { %1628 = vmatpush3.msra.mxu1 %v661_v59 }
 0x130   :  { %1651 = vmatprep.subr.mxu1 %v1316_v60 }
 0x1d0   :  { %v1590_v61 = vpop.f32.mrf.mxu1 }
 0x1d2   :  { %v453_v62 = vpop.f32.mrf.mxu1 }
 0x1d8   :  { %v1601_v63 = vpop.f32.mrf.mxu1 }
 0x1d9   :  { %v540_v2 = vadd.f32 %v1601_v63, %v1590_v61 }
 0x1da   :  { %v534_v1 = vpop.f32.mrf.mxu1 }
 0x1db   :  { %v535_v5 = vadd.f32 %v534_v1, %v453_v62 }
 0x1e0   :  { %v1612_v3 = vpop.f32.mrf.mxu1 }
 0x1e1   :  { %v636_v6 = vadd.f32 %v1612_v3, %v540_v2 }
 0x1e2   :  { %v626_v7 = vpop.f32.mrf.mxu1 }
 0x1e3   :  { %v2105_v8 = vadd.f32 %v1296_v4, %v636_v6  ;;  %v635_v9 = vadd.f32 %v626_v7, %v535_v5 }
 0x1e5   :  { %v2107_v10 = vadd.f32 %v1296_v4, %v635_v9  ;;  %v656_v12 = vrot.slane %v2105_v8, 7  ;;  %v833_v14 = vrot.slane %v2105_v8, 1 }
 0x1e7   :  { %1648 = vmatprep.mubr.msk.f32.mxu0 %vm669_vm11, %v2107_v10  ;;  %v655_v11 = vrot.slane %v2107_v10, 7  ;;  %v832_v13 = vrot.slane %v2107_v10, 1 }
 0x1e8   :  { %1649 = vmatmul.mubr.msk.f32.vlgmr.msra.gmra.mxu0 %vm669_vm11, %v2105_v8 }
 0x1e9   :  { %v658_v15 = vsel %vm82_vm1, %v656_v12, %v655_v11  ;;  %v657_v16 = vsel %vm82_vm1, %v655_v11, %v656_v12  ;;  %v834_v17 = vsel %vm257_vm5, %v832_v13, %v833_v14  ;;  %v835_v29 = vsel %vm257_vm5, %v833_v14, %v832_v13  ;;  %1671 = vmatpush3.msra.mxu0 %v963_v33  ;;  %v1338_v12 = vld [vmem:[%s2274_s7 + $0xb0] sm:$0xff] }
 0x1ea   :  { %v659_v18 = vsel %vm1886_vm0, 0.0, %v658_v15  ;;  %v660_v19 = vsel %vm1899_vm2, 0.0, %v657_v16  ;;  %v836_v22 = vsel %vm1909_vm4, 0.0, %v834_v17  ;;  %v837_v30 = vsel %vm1975_vm8, 0.0, %v835_v29  ;;  %1672 = vmatprep.subr.mxu0 %v962_v34  ;;  %v1334_v14 = vld [vmem:[%s2274_s7 + $0x90] sm:$0xff]  ;;  %v1333_v15 = vld [vmem:[%s2274_s7 + $0x88] sm:$0xff] }
 0x1eb   :  { %1629 = vmatprep.mubr.msk.f32.mxu1 %vm669_vm11, %v659_v18  ;;  %1673 = vmatpush3.msra.mxu0 %v962_v34  ;;  %v1332_v16 = vld [vmem:[%s2274_s7 + $0x80] sm:$0xff] }
 0x1ec   :  { %1630 = vmatmul.mubr.msk.f32.vlgmr.msra.gmra.mxu1 %vm669_vm11, %v660_v19  ;;  %1674 = vmatprep.subr.mxu0 %v961_v37 }
 0x1ed   :  { %1652 = vmatpush3.msra.mxu1 %v1316_v60  ;;  %1667 = vmatprep.mubr.msk.f32.mxu1 %vm669_vm11, %v836_v22 }
 0x1ee   :  { %1653 = vmatprep.subr.mxu1 %v1315_v20  ;;  %1675 = vmatpush3.msra.mxu0 %v961_v37 }
 0x1ef   :  { %1654 = vmatpush3.msra.mxu1 %v1315_v20  ;;  %1676 = vmatprep.subr.mxu0 %v960_v40 }
 0x1f0   :  { %1655 = vmatprep.subr.mxu1 %v1314_v23  ;;  %1677 = vmatpush3.msra.mxu0 %v960_v40 }
 0x1f1   :  { %1656 = vmatpush3.msra.mxu1 %v1314_v23  ;;  %1678 = vmatprep.subr.mxu0 %v959_v43 }
 0x1f2   :  { %1657 = vmatprep.subr.mxu1 %v1313_v24  ;;  %1679 = vmatpush3.msra.mxu0 %v959_v43 }
 0x1f3   :  { %1658 = vmatpush3.msra.mxu1 %v1313_v24  ;;  %1680 = vmatprep.subr.mxu0 %v958_v45 }
 0x1f4   :  { %1659 = vmatprep.subr.mxu1 %v1312_v25  ;;  %1681 = vmatpush3.msra.mxu0 %v958_v45 }
 0x1f5   :  { %1660 = vmatpush3.msra.mxu1 %v1312_v25  ;;  %1682 = vmatprep.subr.mxu0 %v957_v48 }
 0x1f6   :  { %1661 = vmatprep.subr.mxu1 %v1311_v26  ;;  %1683 = vmatpush3.msra.mxu0 %v957_v48 }
 0x1f7   :  { %1662 = vmatpush3.msra.mxu1 %v1311_v26  ;;  %1684 = vmatprep.subr.mxu0 %v956_v49  ;;  %v1342_v26 = vld [vmem:[%s2276_s8] ss:$0 sm:$0xff] }
 0x1f8   :  { %1663 = vmatprep.subr.mxu1 %v1310_v27  ;;  %1685 = vmatpush3.msra.mxu0 %v956_v49 }
 0x1f9   :  { %1664 = vmatpush3.msra.mxu1 %v1310_v27  ;;  %1708 = vmatprep.subr.mxu0 %v1339_v50 }
 0x1fa   :  { %1665 = vmatprep.subr.mxu1 %v1309_v28 }
 0x1fb   :  { %1666 = vmatpush3.msra.mxu1 %v1309_v28 }
 0x1fc   :  { %1668 = vmatmul.mubr.msk.f32.vlgmr.msra.gmra.mxu1 %vm669_vm11, %v837_v30  ;;  %1689 = vmatprep.subr.mxu1 %v1327_v31 }
 0x1fd   :  { %1690 = vmatpush3.msra.mxu1 %v1327_v31 }
 0x1fe   :  { %1691 = vmatprep.subr.mxu1 %v1326_v32 }
 0x1ff   :  { %1692 = vmatpush3.msra.mxu1 %v1326_v32 }
 0x200   :  { %1693 = vmatprep.subr.mxu1 %v1325_v35 }
 0x201   :  { %1694 = vmatpush3.msra.mxu1 %v1325_v35 }
 0x202   :  { %1695 = vmatprep.subr.mxu1 %v1324_v36 }
 0x203   :  { %1696 = vmatpush3.msra.mxu1 %v1324_v36 }
 0x204   :  { %1697 = vmatprep.subr.mxu1 %v1323_v38 }
 0x205   :  { %1698 = vmatpush3.msra.mxu1 %v1323_v38 }
 0x206   :  { %1699 = vmatprep.subr.mxu1 %v1322_v41 }
 0x207   :  { %1700 = vmatpush3.msra.mxu1 %v1322_v41 }
 0x208   :  { %1701 = vmatprep.subr.mxu1 %v1321_v44 }
 0x209   :  { %1702 = vmatpush3.msra.mxu1 %v1321_v44 }
 0x20a   :  { %1703 = vmatprep.subr.mxu1 %v1320_v47 }
 0x20b   :  { %1704 = vmatpush3.msra.mxu1 %v1320_v47 }
 0x2a8   :  { %v1650_v52 = vpop.f32.mrf.mxu0 }
 0x2aa   :  { %v823_v55 = vpop.f32.mrf.mxu0 }
 0x2ac   :  { %v1631_v51 = vpop.f32.mrf.mxu1 }
 0x2ad   :  { %v829_v54 = vadd.f32 %v1650_v52, %v1631_v51 }
 0x2ae   :  { %v742_v53 = vpop.f32.mrf.mxu1 }
 0x2af   :  { %v824_v58 = vadd.f32 %v823_v55, %v742_v53 }
 0x2bc   :  { %v1669_v56 = vpop.f32.mrf.mxu1 }
 0x2bd   :  { %v929_v59 = vadd.f32 %v1669_v56, %v829_v54 }
 0x2be   :  { %v919_v60 = vpop.f32.mrf.mxu1 }
 0x2bf   :  { %v938_v61 = vadd.f32 %v1319_v57, %v929_v59  ;;  %v928_v62 = vadd.f32 %v919_v60, %v824_v58 }
 0x2c1   :  { %v940_v63 = vadd.f32 %v938_v61, %v2105_v8  ;;  %v937_v1 = vadd.f32 %v1319_v57, %v928_v62 }
 0x2c3   :  { %v939_v2 = vadd.f32 %v937_v1, %v2107_v10  ;;  %v951_v4 = vrot.slane %v940_v63, 7  ;;  %v1127_v6 = vrot.slane %v940_v63, 1 }
 0x2c5   :  { %1705 = vmatprep.mubr.msk.f32.mxu1 %vm669_vm11, %v939_v2  ;;  %v950_v3 = vrot.slane %v939_v2, 7  ;;  %v1126_v5 = vrot.slane %v939_v2, 1 }
 0x2c6   :  { %1706 = vmatmul.mubr.msk.f32.vlgmr.msra.gmra.mxu1 %vm669_vm11, %v940_v63 }
 0x2c7   :  { %v953_v7 = vsel %vm82_vm1, %v951_v4, %v950_v3  ;;  %v952_v9 = vsel %vm82_vm1, %v950_v3, %v951_v4  ;;  %v1128_v8 = vsel %vm257_vm5, %v1126_v5, %v1127_v6  ;;  %v1129_v17 = vsel %vm257_vm5, %v1127_v6, %v1126_v5 }
 0x2c8   :  { %v954_v10 = vsel %vm1886_vm0, 0.0, %v953_v7  ;;  %v955_v11 = vsel %vm1899_vm2, 0.0, %v952_v9  ;;  %v1130_v13 = vsel %vm1909_vm4, 0.0, %v1128_v8  ;;  %v1131_v18 = vsel %vm1975_vm8, 0.0, %v1129_v17 }
 0x2c9   :  { %1686 = vmatprep.mubr.msk.f32.mxu0 %vm669_vm11, %v954_v10 }
 0x2ca   :  { %1687 = vmatmul.mubr.msk.f32.vlgmr.msra.gmra.mxu0 %vm669_vm11, %v955_v11 }
 0x2cb   :  { %1709 = vmatpush3.msra.mxu0 %v1339_v50  ;;  %1724 = vmatprep.mubr.msk.f32.mxu0 %vm669_vm11, %v1130_v13 }
 0x2cc   :  { %1710 = vmatprep.subr.mxu0 %v1338_v12 }
 0x2cd   :  { %1711 = vmatpush3.msra.mxu0 %v1338_v12 }
 0x2ce   :  { %1712 = vmatprep.subr.mxu0 %v1337_v39 }
 0x2cf   :  { %1713 = vmatpush3.msra.mxu0 %v1337_v39 }
 0x2d0   :  { %1714 = vmatprep.subr.mxu0 %v1336_v42 }
 0x2d1   :  { %1715 = vmatpush3.msra.mxu0 %v1336_v42 }
 0x2d2   :  { %1716 = vmatprep.subr.mxu0 %v1335_v46 }
 0x2d3   :  { %1717 = vmatpush3.msra.mxu0 %v1335_v46 }
 0x2d4   :  { %1718 = vmatprep.subr.mxu0 %v1334_v14 }
 0x2d5   :  { %1719 = vmatpush3.msra.mxu0 %v1334_v14 }
 0x2d6   :  { %1720 = vmatprep.subr.mxu0 %v1333_v15 }
 0x2d7   :  { %1721 = vmatpush3.msra.mxu0 %v1333_v15 }
 0x2d8   :  { %1722 = vmatprep.subr.mxu0 %v1332_v16 }
 0x2d9   :  { %1723 = vmatpush3.msra.mxu0 %v1332_v16 }
 0x2da   :  { %1725 = vmatmul.mubr.msk.f32.vlgmr.msra.gmra.mxu0 %vm669_vm11, %v1131_v18 }
 0x386   :  { %v1707_v20 = vpop.f32.mrf.mxu1 }
 0x388   :  { %v1117_v24 = vpop.f32.mrf.mxu1 }
 0x38a   :  { %v1688_v19 = vpop.f32.mrf.mxu0 }
 0x38b   :  { %v1123_v23 = vadd.f32 %v1707_v20, %v1688_v19 }
 0x38c   :  { %v1036_v22 = vpop.f32.mrf.mxu0 }
 0x38d   :  { %v1118_v21 = vadd.f32 %v1117_v24, %v1036_v22 }
 0x39a   :  { %v1726_v25 = vpop.f32.mrf.mxu0 }
 0x39b   :  { %v1223_v27 = vadd.f32 %v1726_v25, %v1123_v23 }
 0x39c   :  { %v1213_v28 = vpop.f32.mrf.mxu0 }
 0x39d   :  { %v1232_v29 = vadd.f32 %v1342_v26, %v1223_v27  ;;  %v1222_v30 = vadd.f32 %v1213_v28, %v1118_v21 }
 0x39f   :  { %v1234_v31 = vadd.f32 %v1232_v29, %v940_v63  ;;  %v1231_v0 = vadd.f32 %v1342_v26, %v1222_v30 }
 0x3a1   :  { %1236 = vst.msk [vmem:[%s2277_s9 + $0x8] sm:$0xff] %vm669_vm11, %v1234_v31  ;;  %v1233_v32 = vadd.f32 %v1231_v0, %v939_v2 }
 0x3a3   :  { %1235 = vst.msk [vmem:[%s2277_s9] sm:$0xff] %vm669_vm11, %v1233_v32 }

</bundles_post_ra>
